<compile_context>
chip_gen: v7x
topology: tpu7x:2x2x1
jax: 0.10.0
libtpu: 0.0.40
codegen_flags: <defaults>
</compile_context>

<pallas_src>
import math
import functools

import jax
import jax.numpy as jnp
from jax.experimental import pallas as pl
from jax.experimental.pallas import tpu as pltpu


# ----------------------------------------------------------------------------
# Parameter / buffer setup (mirrors PositionalEncoding.__init__)
# ----------------------------------------------------------------------------
def make_pe_table(d_model: int, max_len: int = 5000, dtype=jnp.float32):
    position = jnp.arange(max_len, dtype=jnp.float32)[:, None]            # (max_len, 1)
    div_term = jnp.exp(
        jnp.arange(0, d_model, 2, dtype=jnp.float32) * (-math.log(10000.0) / d_model)
    )                                                                     # (d_model/2,)
    pe = jnp.zeros((max_len, d_model), dtype=jnp.float32)
    pe = pe.at[:, 0::2].set(jnp.sin(position * div_term))
    pe = pe.at[:, 1::2].set(jnp.cos(position * div_term))
    # Pre-cast once at init so the per-call hot path never pays for an astype.
    return pe.astype(dtype)                                               # (max_len, d_model)


# ----------------------------------------------------------------------------
# Kernels
# ----------------------------------------------------------------------------
def _pe_add_kernel(x_ref, pe_ref, o_ref):
    # x_ref: (tB, W) lane-dense block; pe_ref: (1, W) resident slice.
    o_ref[...] = x_ref[...] + pe_ref[...]


def _hash_u32(x):
    # lowbias32-style integer avalanche hash (uint32, wrapping arithmetic).
    x = x ^ (x >> 16)
    x = x * jnp.uint32(0x7FEB352D)
    x = x ^ (x >> 15)
    x = x * jnp.uint32(0x846CA68B)
    x = x ^ (x >> 16)
    return x


def _pe_add_dropout_kernel(seed_ref, x_ref, pe_ref, o_ref, *, p, block_elems):
    # Inverted dropout, like nn.Dropout(p), using a counter-based hash PRNG
    # (portable: no pltpu.prng_seed, which has no CPU/interpret lowering).
    y = x_ref[...] + pe_ref[...]

    tb, w = y.shape
    rows = jax.lax.broadcasted_iota(jnp.int32, (tb, w), 0)
    cols = jax.lax.broadcasted_iota(jnp.int32, (tb, w), 1)
    local = (rows * w + cols).astype(jnp.uint32)
    base = pl.program_id(0).astype(jnp.uint32) * jnp.uint32(block_elems)
    # Mix the seed with a large odd constant so adjacent seeds decorrelate.
    key = _hash_u32(seed_ref[0].astype(jnp.uint32) * jnp.uint32(0x9E3779B1)
                    + jnp.uint32(0x85EBCA6B))
    bits = _hash_u32(local + base + key)

    # Integer-threshold compare: keep iff low-23 random bits >= p * 2^23.
    threshold = jnp.uint32(int(round(float(p) * float(1 << 23))))
    keep = (bits & jnp.uint32(0x7FFFFF)) >= threshold

    scale = 1.0 / (1.0 - float(p))
    o_ref[...] = jnp.where(keep, y * scale, 0.0).astype(o_ref.dtype)


# ----------------------------------------------------------------------------
# Wrapper (mirrors PositionalEncoding.forward)
# ----------------------------------------------------------------------------
def positional_encoding_forward(x, pe_table, *, p: float = 0.1,
                                training: bool = False, seed: int = 0):
    L0, L1, D = x.shape
    if L1 != L0:
        raise ValueError(
            "PyTorch module's broadcast (x + pe[:x.size(0)].transpose(0,1)) "
            "requires x.shape[1] == x.shape[0]."
        )
    if pe_table.dtype != x.dtype:           # should already be pre-cast at init
        pe_table = pe_table.astype(x.dtype)

    W = L1 * D
    x2 = x.reshape(L0, W)                   # lane-dense 2-D slab (zero-copy view)
    pe_row = pe_table[:L1].reshape(1, W)    # tiny (L1*D elems) vs x traffic

    itemsize = jnp.dtype(x.dtype).itemsize
    row_bytes = W * itemsize

    # Multi-MiB blocks on the batch axis; multiple-of-8 sublanes when tiled.
    target_block_bytes = 4 * 1024 * 1024
    rows_fit = max(1, target_block_bytes // max(row_bytes, 1))
    if rows_fit >= L0:
        tB = L0
    else:
        tB = min(max(8, (rows_fit // 8) * 8), L0)
    grid = (pl.cdiv(L0, tB),)
    # TODO(synk): for very large L1*D (block row > ~8 MiB) add a second grid
    #             axis tiling the flattened W axis as well.

    x_spec = pl.BlockSpec((tB, W), lambda i, *_: (i, 0))
    pe_spec = pl.BlockSpec((1, W), lambda i, *_: (0, 0))   # constant -> stays resident
    out_spec = pl.BlockSpec((tB, W), lambda i, *_: (i, 0))
    out_shape = jax.ShapeDtypeStruct((L0, W), x.dtype)

    compiler_params = pltpu.CompilerParams(
        dimension_semantics=("parallel",),
        vmem_limit_bytes=48 * 1024 * 1024,
    )
    bytes_accessed = 2 * L0 * W * itemsize + W * itemsize
    cost = pl.CostEstimate(flops=L0 * W, transcendentals=0,
                           bytes_accessed=bytes_accessed)

    if not training or p == 0.0:
        out2 = pl.pallas_call(
            _pe_add_kernel,
            out_shape=out_shape,
            grid_spec=pltpu.PrefetchScalarGridSpec(
                num_scalar_prefetch=0,
                grid=grid,
                in_specs=[x_spec, pe_spec],
                out_specs=out_spec,
            ),
            compiler_params=compiler_params,
            cost_estimate=cost,
        )(x2, pe_row)
        return out2.reshape(L0, L1, D)

    kernel = functools.partial(_pe_add_dropout_kernel,
                               p=float(p), block_elems=tB * W)
    seed_arr = jnp.asarray([seed], dtype=jnp.int32)
    out2 = pl.pallas_call(
        kernel,
        out_shape=out_shape,
        grid_spec=pltpu.PrefetchScalarGridSpec(
            num_scalar_prefetch=1,                 # seed lands in SMEM
            grid=grid,
            in_specs=[x_spec, pe_spec],
            out_specs=out_spec,
        ),
        compiler_params=compiler_params,
        cost_estimate=cost,
    )(seed_arr, x2, pe_row)
    return out2.reshape(L0, L1, D)


# ----------------------------------------------------------------------------
# Demo / self-check
# ----------------------------------------------------------------------------
if __name__ == "__main__":
    d_model = 32
    seq = 8      # x.shape[0]; the PyTorch broadcast requires x.shape[1] == x.shape[0]
    max_len = 64
    p = 0.1

    key = jax.random.PRNGKey(0)
    x = jax.random.normal(key, (seq, seq, d_model), dtype=jnp.float32)
    pe_table = make_pe_table(d_model, max_len=max_len, dtype=jnp.float32)

    # Pure-JAX reference of the PyTorch forward (eval mode: dropout = identity).
    ref = x + pe_table[:seq][None, :, :]            # out[a,s,:] = x[a,s,:] + pe[s,:]

    # Eval-mode forward.
    out = positional_encoding_forward(x, pe_table, training=False)
    out = jax.block_until_ready(out)
    max_err = float(jnp.max(jnp.abs(out - ref)))
    assert max_err < 1e-6, f"eval mismatch: {max_err}"

    # Training-mode forward (stochastic dropout): every element must be either
    # exactly 0 (dropped) or (x + pe) / (1 - p) (kept).
    out_train = positional_encoding_forward(x, pe_table, p=p, training=True, seed=42)
    out_train = jax.block_until_ready(out_train)
    kept_ref = ref * (1.0 / (1.0 - p))
    ok = jnp.logical_or(out_train == 0.0, jnp.abs(out_train - kept_ref) < 1e-4)
    assert bool(jnp.all(ok)), "training-mode dropout values inconsistent"

    print("KERNEL_OK")
</pallas_src>

<mosaic_0001>
module attributes {stable_mosaic.version = 11 : i64} {
  func.func @_pe_add_kernel(%arg0: i32, %arg1: memref<8x256xf32, #tpu.memory_space<vmem>>, %arg2: memref<1x256xf32, #tpu.memory_space<vmem>>, %arg3: memref<8x256xf32, #tpu.memory_space<vmem>>) attributes {dimension_semantics = [#tpu.dimension_semantics<parallel>], iteration_bounds = array<i64: 1>, scalar_prefetch = 0 : i64, scratch_operands = 0 : i64, tpu.core_type = #tpu.core_type<tc>, window_params = [{transform_indices = @transform_0, window_bounds = array<i64: 8, 256>}, {pipeline_mode = #tpu.pipeline_mode<synchronous>, transform_indices = @transform_1, window_bounds = array<i64: 1, 256>}, {transform_indices = @transform_2, window_bounds = array<i64: 8, 256>}]} {
    %c0 = arith.constant 0 : index
    %c0_0 = arith.constant 0 : index
    %0 = vector.load %arg1[%c0, %c0_0] : memref<8x256xf32, #tpu.memory_space<vmem>>, vector<8x256xf32>
    %c0_1 = arith.constant 0 : index
    %c0_2 = arith.constant 0 : index
    %1 = vector.load %arg2[%c0_1, %c0_2] : memref<1x256xf32, #tpu.memory_space<vmem>>, vector<1x256xf32>
    %2 = vector.broadcast %1 : vector<1x256xf32> to vector<8x256xf32>
    %3 = arith.addf %0, %2 : vector<8x256xf32>
    %c0_3 = arith.constant 0 : index
    %c0_4 = arith.constant 0 : index
    %4 = vector.load %arg3[%c0_3, %c0_4] : memref<8x256xf32, #tpu.memory_space<vmem>>, vector<8x256xf32>
    tpu.vector_store %arg3[%c0_3, %c0_4], %3 {strides = array<i32>} : memref<8x256xf32, #tpu.memory_space<vmem>>, vector<8x256xf32>,
    return
  }
  func.func @transform_0(%arg0: i32) -> (i32, i32) {
    %c0_i32 = arith.constant 0 : i32
    %c0_i32_0 = arith.constant 0 : i32
    return %arg0, %c0_i32 : i32, i32
  }
  func.func @transform_1(%arg0: i32) -> (i32, i32) {
    %c0_i32 = arith.constant 0 : i32
    %c0_i32_0 = arith.constant 0 : i32
    %c0_i32_1 = arith.constant 0 : i32
    return %c0_i32, %c0_i32_0 : i32, i32
  }
  func.func @transform_2(%arg0: i32) -> (i32, i32) {
    %c0_i32 = arith.constant 0 : i32
    %c0_i32_0 = arith.constant 0 : i32
    return %arg0, %c0_i32 : i32, i32
  }
}

</mosaic_0001>

<bundles_post_ra>
// kernel: tpu_custom_call.1
= control target key start
LH: loop header
LB: loop body
LE: loop exit
PB: predicated region body
PF: predicated region fallthrough
CT: control target
= control target key end

     0   :  { %7 = vsyncpa [#allocation3], 0  ;;  %s151_s0 = inlined_call_operand.hbm [shape: f32[8,256], index: 0, kind: input, shape index: {}]   ;;  %s152_s1 = inlined_call_operand.vmem [shape: f32[1,256], index: 1, kind: input, shape index: {}]   ;;  %s153_s2 = inlined_call_operand.hbm [shape: f32[8,256], index: 2, kind: output, shape index: {}]  }
   0x1   :  { %8 = vsyncpa [#allocation4], 0  ;;  %s107_s9 = smov [#allocation2]   ;;  %s59_s13 = scalar_lea.hbm %s151_s0, 256 }
   0x2   :  { %s15_s10 = sshll.u32 %s107_s9, 4  ;;  %p60_p0 = scmp.ne.s32.totalorder %s151_s0, %s59_s13  ;;  %s16_s10 = int_to_ptr.vmem [resolvable:$true] %s15_s10 }
   0x3   :  { %p63_p1 = scmp.lt.u32.totalorder %s59_s13, %s151_s0 }
   0x5   :  { %p65_p2 = pnand %p63_p1, %p60_p0 }
   0x7   :  { %68 = shalt.err (!%p65_p2)
}
   0x8   :  { %s69_s18 = scalar_lea.vmem %s16_s10, 256  ;;  %p74_p4 = scmp.lt.s32.totalorder %s16_s10, %s16_s10 }
   0x9   :  { %p70_p3 = scmp.ne.s32.totalorder %s16_s10, %s69_s18  ;;  %p75_p5 = scmp.lt.s32.totalorder %s69_s18, %s69_s18 }
   0xb   :  { %p76_p6 = por %p75_p5, %p74_p4 }
   0xd   :  { %p77_p7 = pnand %p76_p6, %p70_p3 }
   0xf   :  { %80 = shalt.err (!%p77_p7)
}
  0x10   :  { %18 = dma.hbm_to_vmem [thread:$0]  %s151_s0, 256, %s16_s10, [#allocation3]  }
  0x11   :  { %103 = dma.done.wait [#allocation3], 256  }
  0x12   :  { %104 = vsyncadd [#allocation3], 4294967040  ;;  %v28_v0 = vlaneseq  ;;  %v24_v4 = vld [vmem:[#allocation2] sm:$0xff]  ;;  %v25_v6 = vld [vmem:[#allocation2 + $0x8] sm:$0xff]  ;;  %s108_s23 = smov [#allocation5]  }
  0x13   :  { %v26_v5 = vld [vmem:[%s152_s1] sm:$0x3]  ;;  %s48_s24 = sshll.u32 %s108_s23, 4  ;;  %s49_s24 = int_to_ptr.vmem [resolvable:$true] %s48_s24 }
  0x14   :  { %v29_v1 = vshrl.u32 %v28_v0, 7  ;;  %s81_s0 = scalar_lea.vmem %s49_s24, 256  ;;  %p86_p9 = scmp.lt.s32.totalorder %s49_s24, %s49_s24 }
  0x15   :  { %p82_p8 = scmp.ne.s32.totalorder %s49_s24, %s81_s0  ;;  %p87_p10 = scmp.lt.s32.totalorder %s81_s0, %s81_s0 }
  0x16   :  { %v30_v2 = vsub.s32 0, %v29_v1  ;;  %v34_v3 = vsub.s32 1, %v29_v1 }
  0x17   :  { %p88_p11 = por %p87_p10, %p86_p9 }
  0x18   :  { %v31_v7 = vrot.slane %v26_v5, %v30_v2  ;;  %v35_v8 = vrot.slane %v26_v5, %v34_v3 }
  0x19   :  { %p89_p12 = pnand %p88_p11, %p82_p8 }
  0x1a   :  { %v38_v9 = vadd.f32 %v31_v7, %v24_v4  ;;  %v39_v10 = vadd.f32 %v35_v8, %v25_v6 }
  0x1c   :  { %40 = vst [vmem:[#allocation5] sm:$0xff] %v38_v9  ;;  %41 = vst [vmem:[#allocation5 + $0x8] sm:$0xff] %v39_v10 }
  0x1d   :  { %92 = shalt.err (!%p89_p12)
}
  0x1e   :  { %s93_s1 = scalar_lea.hbm %s153_s2, 256 }
  0x1f   :  { %p94_p13 = scmp.ne.s32.totalorder %s153_s2, %s93_s1  ;;  %p97_p0 = scmp.lt.u32.totalorder %s93_s1, %s153_s2 }
  0x21   :  { %p99_p1 = pnand %p97_p0, %p94_p13 }
  0x23   :  { %102 = shalt.err (!%p99_p1)
}
  0x24   :  { %51 = dma.vmem_to_hbm [thread:$0]  %s49_s24, 256, %s153_s2, [#allocation4]  }
  0x25   :  { %105 = dma.done.wait [#allocation4], 256  }
  0x26   :  { %106 = vsyncadd [#allocation4], 4294967040 }
  0x27   :  { %55 = vsyncpa [#allocation3], 1 }
  0x28   :  { %56 = vsyncpa [#allocation4], 1 }

</bundles_post_ra>
